<compile_context>
chip_gen: v7x
topology: tpu7x:2x2x1
jax: 0.10.0
libtpu: 0.0.40
codegen_flags: <defaults>
</compile_context>

<pallas_src>
import functools

import jax
import jax.numpy as jnp
from jax import lax
from jax.experimental import pallas as pl
from jax.experimental.pallas import tpu as pltpu


def _vmem_capacity_bytes() -> int:
    """Physical VMEM per TensorCore; conservative fallback (v7x = 64 MiB)."""
    try:
        info = pltpu.get_tpu_info()
        cap = int(getattr(info, "vmem_capacity_bytes", 0))
        if cap > 0:
            return cap
    except Exception:
        pass
    return 64 << 20


def _corr_stats_kernel(x_ref, g_ref, m_ref, *, n_rows, block_rows, ksteps, padded):
    """x_ref: (TN, D) VMEM tile.  g_ref: (D, D), m_ref: (1, D) per-split output
    blocks used as resident accumulators across the inner ('arbitrary') axis."""
    k = pl.program_id(1)

    @pl.when(k == 0)
    def _init():
        g_ref[...] = jnp.zeros_like(g_ref)
        m_ref[...] = jnp.zeros_like(m_ref)

    def accumulate(x):
        # Gram accumulation on the MXU: contract the batch axis of both
        # operands directly (no materialized transpose / XLU work).
        g_ref[...] += lax.dot_general(
            x, x, dimension_numbers=(((0,), (0,)), ((), ())),
            preferred_element_type=jnp.float32)
        # Column sums on the VPU (always f32).
        m_ref[...] += jnp.sum(x.astype(jnp.float32), axis=0, keepdims=True)

    if not padded:
        # No tile ever touches rows >= N: unmasked fast path for every step.
        accumulate(x_ref[...])
    else:
        tile_idx = pl.program_id(0) * ksteps + k     # global row-tile index
        tile_start = tile_idx * block_rows
        is_full = tile_start + block_rows <= n_rows

        @pl.when(is_full)
        def _full():
            accumulate(x_ref[...])

        @pl.when(jnp.logical_not(is_full))
        def _ragged():
            # Only the ragged / fully-out-of-range tiles pay the mask.
            row = tile_start + lax.broadcasted_iota(
                jnp.int32, (block_rows, 1), 0)
            x = jnp.where(row < n_rows, x_ref[...], jnp.zeros_like(x_ref[...]))
            accumulate(x)


def _reference_loss(x: jax.Array) -> jax.Array:
    """Pure-JAX forward (also used as the small-shape fallback)."""
    x = x.astype(jnp.float32)
    n = x.shape[0]
    zeroed = x - jnp.mean(x, axis=0, keepdims=True)
    cor = zeroed.T @ zeroed
    no_diag = cor - jnp.diag(jnp.diagonal(cor))
    return jnp.sqrt(jnp.sum(no_diag * no_diag)) / n


def correlation_penalty_loss(x: jax.Array, *,
                             block_rows: int | None = None,
                             use_pallas: bool | None = None) -> jax.Array:
    """Pallas implementation of CorrelationPenaltyLoss.forward for (N, D) input."""
    assert x.ndim == 2, "CorrelationPenaltyLoss expects a (N, D) matrix"
    n, d = x.shape
    itemsize = jnp.dtype(x.dtype).itemsize
    sub = max(8, 32 // max(int(itemsize), 1))   # f32 -> 8, bf16 -> 16, int8 -> 32

    if use_pallas is None:
        # Tiny problems / narrow D: lane dim (<128) gets padded and the fixed
        # pallas_call overhead dominates; XLA fusion is already near-optimal.
        use_pallas = (d >= 128) and (n >= 1024)
    if not use_pallas:
        return _reference_loss(x)

    # ---- Tile sizing from a per-generation VMEM budget ---------------------
    vmem_cap = _vmem_capacity_bytes()
    # Clamp to ~40 MiB so a config tuned on v5e/v6e (128 MiB) still fits v7x (64 MiB).
    budget = min(int(vmem_cap * 0.45), 40 << 20)

    if block_rows is None:
        # Double-buffered (D,D)+(1,D) output blocks + slack, rest for the
        # double-buffered input tile.
        fixed = 2 * d * d * 4 + 2 * d * 4 + (1 << 20)
        avail = max(budget - fixed, 2 * sub * d * itemsize)
        block_rows = max(sub, (avail // (2 * d * itemsize) // sub) * sub)
    if block_rows >= n:
        block_rows = n                      # single full-extent tile (always legal)
    elif block_rows % sub != 0:
        block_rows = max(sub, (block_rows // sub) * sub)

    # ---- Grid: split the N reduction across (up to) 2 TensorCores ----------
    total_tiles = pl.cdiv(n, block_rows)
    nsplits = 2 if total_tiles >= 2 else 1
    ksteps = pl.cdiv(total_tiles, nsplits)
    grid_tiles = nsplits * ksteps
    padded = grid_tiles * block_rows > n        # some tile touches rows >= N
    clamp_needed = grid_tiles > total_tiles     # some tile is fully out of range
    last_block = total_tiles - 1

    def x_index_map(s, k):
        idx = s * ksteps + k
        if clamp_needed:
            # Fully-out-of-range tiles re-read the last valid block; the kernel
            # masks them to zero, so correctness is unaffected.
            idx = jnp.minimum(idx, last_block)
        return (idx, 0)

    kernel = functools.partial(
        _corr_stats_kernel, n_rows=n, block_rows=block_rows,
        ksteps=ksteps, padded=padded)

    needed = (2 * block_rows * d * itemsize   # double-buffered input tile
              + 2 * d * d * 4 + 2 * d * 4     # double-buffered output blocks
              + (2 << 20))                    # slack
    vmem_limit = int(max(needed, 16 << 20))

    partial_g, partial_m = pl.pallas_call(
        kernel,
        out_shape=(jax.ShapeDtypeStruct((nsplits, d, d), jnp.float32),
                   jax.ShapeDtypeStruct((nsplits, 1, d), jnp.float32)),
        grid=(nsplits, ksteps),
        in_specs=[pl.BlockSpec((block_rows, d), x_index_map)],
        out_specs=(pl.BlockSpec((None, d, d), lambda s, k: (s, 0, 0)),
                   pl.BlockSpec((None, 1, d), lambda s, k: (s, 0, 0))),
        compiler_params=pltpu.CompilerParams(
            dimension_semantics=("parallel", "arbitrary"),
            vmem_limit_bytes=vmem_limit),
    )(x)

    # ---- Tiny finalize in JAX (D x D, negligible) ---------------------------
    g = jnp.sum(partial_g, axis=0) if nsplits > 1 else partial_g[0]
    m = jnp.sum(partial_m, axis=0) if nsplits > 1 else partial_m[0]   # (1, D)
    inv_n = jnp.float32(1.0 / n)
    cor = g - (m.T @ m) * inv_n            # Gram of centered data, (D, D)
    diag = jnp.diagonal(cor)               # diag from the SAME matrix (exact removal)
    off_sq = jnp.sum(cor * cor) - jnp.sum(diag * diag)
    off_sq = jnp.maximum(off_sq, jnp.float32(0.0))   # guard tiny negative
    return jnp.sqrt(off_sq) * inv_n


if __name__ == "__main__":
    key = jax.random.PRNGKey(0)
    k1, k2 = jax.random.split(key)

    # 1) Small descriptor batch matching the module's typical input (N=8, D=32);
    #    force the Pallas path (single full-extent tile, one split).
    x_small = jax.random.normal(k1, (8, 32), dtype=jnp.float32)
    loss_small = jax.block_until_ready(
        jax.jit(functools.partial(correlation_penalty_loss, use_pallas=True))(x_small))
    ref_small = _reference_loss(x_small)
    assert jnp.allclose(loss_small, ref_small, rtol=1e-4, atol=1e-5), (
        loss_small, ref_small)

    # 2) Exercise the tiled path: grid > 1, two splits, ragged last tile AND one
    #    fully-out-of-range (clamped + fully masked) tile: 1040 rows / 256-row
    #    tiles -> 5 tiles over a 2x3 grid.
    x_big = jax.random.normal(k2, (1040, 128), dtype=jnp.float32)
    loss_big = jax.block_until_ready(
        jax.jit(functools.partial(correlation_penalty_loss,
                                  block_rows=256, use_pallas=True))(x_big))
    ref_big = _reference_loss(x_big)
    assert jnp.allclose(loss_big, ref_big, rtol=1e-3, atol=1e-4), (
        loss_big, ref_big)

    # 3) Auto dispatch (VMEM-budget-derived tile; covers the whole array here).
    loss_auto = jax.block_until_ready(jax.jit(correlation_penalty_loss)(x_big))
    assert jnp.allclose(loss_auto, ref_big, rtol=1e-3, atol=1e-4), (
        loss_auto, ref_big)

    print("KERNEL_OK")
</pallas_src>

<mosaic_0001>
module attributes {stable_mosaic.version = 11 : i64} {
  func.func @_corr_stats_kernel(%arg0: i32, %arg1: i32, %arg2: memref<8x32xf32, #tpu.memory_space<vmem>>, %arg3: memref<1x32x32xf32, #tpu.memory_space<vmem>>, %arg4: memref<1x1x32xf32, #tpu.memory_space<vmem>>) attributes {dimension_semantics = [#tpu.dimension_semantics<parallel>, #tpu.dimension_semantics<arbitrary>], iteration_bounds = array<i64: 1, 1>, scalar_prefetch = 0 : i64, scratch_operands = 0 : i64, tpu.core_type = #tpu.core_type<tc>, window_params = [{transform_indices = @transform_0, window_bounds = array<i64: 8, 32>}, {transform_indices = @transform_1, window_bounds = array<i64: 1, 32, 32>}, {transform_indices = @transform_2, window_bounds = array<i64: 1, 1, 32>}]} {
    %c0_i32 = arith.constant 0 : i32
    %0 = arith.cmpi eq, %arg1, %c0_i32 : i32
    %1 = arith.extui %0 : i1 to i32
    %c0_i32_0 = arith.constant 0 : i32
    %2 = arith.cmpi ne, %1, %c0_i32_0 : i32
    scf.if %2 {
      %cst_15 = arith.constant 0.000000e+00 : f32
      %19 = vector.broadcast %cst_15 : f32 to vector<32x32xf32>
      %c0_16 = arith.constant 0 : index
      %c0_17 = arith.constant 0 : index
      %c0_18 = arith.constant 0 : index
      %20 = vector.load %arg3[%c0_16, %c0_17, %c0_18] : memref<1x32x32xf32, #tpu.memory_space<vmem>>, vector<1x32x32xf32>
      %21 = vector.shape_cast %20 : vector<1x32x32xf32> to vector<32x32xf32>
      %22 = vector.shape_cast %19 : vector<32x32xf32> to vector<1x32x32xf32>
      tpu.vector_store %arg3[%c0_16, %c0_17, %c0_18], %22 {strides = array<i32>} : memref<1x32x32xf32, #tpu.memory_space<vmem>>, vector<1x32x32xf32>,
      %cst_19 = arith.constant 0.000000e+00 : f32
      %23 = vector.broadcast %cst_19 : f32 to vector<1x32xf32>
      %c0_20 = arith.constant 0 : index
      %c0_21 = arith.constant 0 : index
      %c0_22 = arith.constant 0 : index
      %24 = vector.load %arg4[%c0_20, %c0_21, %c0_22] : memref<1x1x32xf32, #tpu.memory_space<vmem>>, vector<1x1x32xf32>
      %25 = vector.shape_cast %24 : vector<1x1x32xf32> to vector<1x32xf32>
      %26 = vector.shape_cast %23 : vector<1x32xf32> to vector<1x1x32xf32>
      tpu.vector_store %arg4[%c0_20, %c0_21, %c0_22], %26 {strides = array<i32>} : memref<1x1x32xf32, #tpu.memory_space<vmem>>, vector<1x1x32xf32>,
    } else {
    }
    %c0 = arith.constant 0 : index
    %c0_1 = arith.constant 0 : index
    %3 = vector.load %arg2[%c0, %c0_1] : memref<8x32xf32, #tpu.memory_space<vmem>>, vector<8x32xf32>
    %c0_2 = arith.constant 0 : index
    %c0_3 = arith.constant 0 : index
    %c0_4 = arith.constant 0 : index
    %4 = vector.load %arg3[%c0_2, %c0_3, %c0_4] : memref<1x32x32xf32, #tpu.memory_space<vmem>>, vector<1x32x32xf32>
    %5 = vector.shape_cast %4 : vector<1x32x32xf32> to vector<32x32xf32>
    %cst = arith.constant dense<0.000000e+00> : vector<32x32xf32>
    %6 = tpu.matmul %3, %3, %cst {dimension_numbers = #tpu.dot_dimension_numbers<[0], [0], [1], [1], [0, 1, 1, 1], [], []>} : vector<8x32xf32>, vector<8x32xf32>, vector<32x32xf32> -> vector<32x32xf32>
    %7 = arith.addf %5, %6 : vector<32x32xf32>
    %c0_5 = arith.constant 0 : index
    %c0_6 = arith.constant 0 : index
    %c0_7 = arith.constant 0 : index
    %8 = vector.load %arg3[%c0_5, %c0_6, %c0_7] : memref<1x32x32xf32, #tpu.memory_space<vmem>>, vector<1x32x32xf32>
    %9 = vector.shape_cast %8 : vector<1x32x32xf32> to vector<32x32xf32>
    %10 = vector.shape_cast %7 : vector<32x32xf32> to vector<1x32x32xf32>
    tpu.vector_store %arg3[%c0_5, %c0_6, %c0_7], %10 {strides = array<i32>} : memref<1x32x32xf32, #tpu.memory_space<vmem>>, vector<1x32x32xf32>,
    %c0_8 = arith.constant 0 : index
    %c0_9 = arith.constant 0 : index
    %c0_10 = arith.constant 0 : index
    %11 = vector.load %arg4[%c0_8, %c0_9, %c0_10] : memref<1x1x32xf32, #tpu.memory_space<vmem>>, vector<1x1x32xf32>
    %12 = vector.shape_cast %11 : vector<1x1x32xf32> to vector<1x32xf32>
    %cst_11 = arith.constant dense<0.000000e+00> : vector<32xf32>
    %13 = vector.multi_reduction <add>, %3, %cst_11 [0] : vector<8x32xf32> to vector<32xf32>
    %14 = vector.shape_cast %13 : vector<32xf32> to vector<1x32xf32>
    %15 = arith.addf %12, %14 : vector<1x32xf32>
    %c0_12 = arith.constant 0 : index
    %c0_13 = arith.constant 0 : index
    %c0_14 = arith.constant 0 : index
    %16 = vector.load %arg4[%c0_12, %c0_13, %c0_14] : memref<1x1x32xf32, #tpu.memory_space<vmem>>, vector<1x1x32xf32>
    %17 = vector.shape_cast %16 : vector<1x1x32xf32> to vector<1x32xf32>
    %18 = vector.shape_cast %15 : vector<1x32xf32> to vector<1x1x32xf32>
    tpu.vector_store %arg4[%c0_12, %c0_13, %c0_14], %18 {strides = array<i32>} : memref<1x1x32xf32, #tpu.memory_space<vmem>>, vector<1x1x32xf32>,
    return
  }
  func.func @transform_0(%arg0: i32, %arg1: i32) -> (i32, i32) {
    %c1_i32 = arith.constant 1 : i32
    %0 = arith.muli %arg0, %c1_i32 : i32
    %1 = arith.addi %0, %arg1 : i32
    %c0_i32 = arith.constant 0 : i32
    %c0_i32_0 = arith.constant 0 : i32
    return %1, %c0_i32 : i32, i32
  }
  func.func @transform_1(%arg0: i32, %arg1: i32) -> (i32, i32, i32) {
    %c0_i32 = arith.constant 0 : i32
    %c0_i32_0 = arith.constant 0 : i32
    %c0_i32_1 = arith.constant 0 : i32
    return %arg0, %c0_i32, %c0_i32_0 : i32, i32, i32
  }
  func.func @transform_2(%arg0: i32, %arg1: i32) -> (i32, i32, i32) {
    %c0_i32 = arith.constant 0 : i32
    %c0_i32_0 = arith.constant 0 : i32
    %c0_i32_1 = arith.constant 0 : i32
    return %arg0, %c0_i32, %c0_i32_0 : i32, i32, i32
  }
}

</mosaic_0001>

<bundles_post_ra>
// kernel: correlation_penalty_loss.1
= control target key start
LH: loop header
LB: loop body
LE: loop exit
PB: predicated region body
PF: predicated region fallthrough
CT: control target
= control target key end

     0   :  { %8 = vsyncpa [#allocation3], 0  ;;  %s246_s9 = smov [#allocation2]   ;;  %s331_s0 = inlined_call_operand.hbm [shape: f32[8,32], index: 0, kind: input, shape index: {}]   ;;  %s332_s1 = inlined_call_operand.vmem [shape: f32[1,32,32], index: 1, kind: output, shape index: {0}]   ;;  %s333_s2 = inlined_call_operand.vmem [shape: f32[1,1,32], index: 2, kind: output, shape index: {1}]  }
   0x1   :  { %s18_s10 = sshll.u32 %s246_s9, 4  ;;  %s222_s13 = scalar_lea.hbm %s331_s0, 128  ;;  %s19_s10 = int_to_ptr.vmem [resolvable:$true] %s18_s10 }
   0x2   :  { %p223_p0 = scmp.ne.s32.totalorder %s331_s0, %s222_s13  ;;  %p226_p1 = scmp.lt.u32.totalorder %s222_s13, %s331_s0 }
   0x4   :  { %p228_p2 = pnand %p226_p1, %p223_p0 }
   0x6   :  { %231 = shalt.err (!%p228_p2)
}
   0x7   :  { %s232_s18 = scalar_lea.vmem %s19_s10, 128  ;;  %p237_p4 = scmp.lt.s32.totalorder %s19_s10, %s19_s10 }
   0x8   :  { %p233_p3 = scmp.ne.s32.totalorder %s19_s10, %s232_s18  ;;  %p238_p5 = scmp.lt.s32.totalorder %s232_s18, %s232_s18 }
   0xa   :  { %p239_p6 = por %p238_p5, %p237_p4 }
   0xc   :  { %p240_p7 = pnand %p239_p6, %p233_p3 }
   0xe   :  { %243 = shalt.err (!%p240_p7)
}
   0xf   :  { %21 = dma.hbm_to_vmem [thread:$0]  %s331_s0, 128, %s19_s10, [#allocation3]  }
  0x10   :  { %244 = dma.done.wait [#allocation3], 128  }
  0x11   :  { %245 = vsyncadd [#allocation3], 4294967168  ;;  %v37_v0 = vld [vmem:[#allocation2] sm:$0xff]  ;;  %vm30_vm0 = vcmask 261120   ;;  %vm35_vm1 = vcmask 253952   ;;  %v247_v1 = vmov 0.0  }
  0x12   :  { %42 = vxpose.xlu0.b32.start.end [1/1] (short) (narrow) %v37_v0, 32  ;;  %210 = vmatprep.subr.mxu0 %v37_v0  ;;  %32 = vst.msk [vmem:[%s332_s1 + $0x8] sm:$0xff] %vm30_vm0, %v247_v1  ;;  %31 = vst.msk [vmem:[%s332_s1] sm:$0xff] %vm30_vm0, %v247_v1  ;;  %vm74_vm2 = vcmask 64512   ;;  %v182_v6 = vsel %vm30_vm0, %v37_v0, 0.0 }
  0x13   :  { %211 = vmatpush3.msra.mxu0 %v37_v0  ;;  %218 = vmatprep.subr.mxu1 %v37_v0  ;;  %36 = vst.msk [vmem:[%s333_s2] sm:$0x1] %vm35_vm1, %v247_v1  ;;  %v183_v7 = vrot.slane %v182_v6, 4 }
  0x14   :  { %219 = vmatpush3.msra.mxu1 %v37_v0  ;;  %33 = vst.msk [vmem:[%s332_s1 + $0x10] sm:$0xff] %vm30_vm0, %v247_v1  ;;  %34 = vst.msk [vmem:[%s332_s1 + $0x18] sm:$0xff] %vm30_vm0, %v247_v1 }
  0x15   :  { %v184_v8 = vadd.f32 %v183_v7, %v182_v6 }
  0x17   :  { %v185_v9 = vrot.slane %v184_v8, 2 }
  0x19   :  { %v186_v10 = vadd.f32 %v185_v9, %v184_v8  ;;  %v39_v15 = vld [vmem:[%s332_s1 + $0x8] sm:$0xff]  ;;  %v38_v16 = vld [vmem:[%s332_s1] sm:$0xff] }
  0x1a   :  { %v181_v13 = vld [vmem:[%s333_s2] sm:$0x1] }
  0x1b   :  { %v187_v11 = vrot.slane %v186_v10, 1  ;;  %v41_v21 = vld [vmem:[%s332_s1 + $0x18] sm:$0xff]  ;;  %v40_v22 = vld [vmem:[%s332_s1 + $0x10] sm:$0xff] }
  0x1d   :  { %v188_v12 = vadd.f32 %v187_v11, %v186_v10 }
  0x1f   :  { %v189_v14 = vadd.f32 %v188_v12, %v181_v13 }
  0x21   :  { %191 = vst.msk [vmem:[%s333_s2] sm:$0x1] %vm35_vm1, %v189_v14 }
  0x92   :  { %v58_v2 = vpop.trf.xlu0 }
  0x93   :  { %212 = vmatprep.mubr.msk.f32.mxu0 %vm74_vm2, %v58_v2 }
  0x96   :  { %v59_v3 = vpop.trf.xlu0 }
  0x97   :  { %213 = vmatmul.mubr.msk.f32.vlgmr.msra.gmra.mrb[0].mxu0 %vm74_vm2, %v59_v3 }
  0x9a   :  { %v60_v4 = vpop.trf.xlu0 }
  0x9b   :  { %215 = vmatprep.mubr.msk.f32.mxu1 %vm74_vm2, %v60_v4 }
  0x9e   :  { %v61_v5 = vpop.trf.xlu0 }
  0x9f   :  { %216 = vmatmul.mubr.msk.f32.vlgmr.msra.gmra.mrb[0].mxu1 %vm74_vm2, %v61_v5 }
 0x16a   :  { %v214_v17 = vpop.f32.mrb[0].mxu0 }
 0x16b   :  { %v173_v18 = vadd.f32 %v214_v17, %v39_v15  ;;  %v153_v19 = vpop.f32.mrb[1].mxu0 }
 0x16c   :  { %v172_v20 = vadd.f32 %v153_v19, %v38_v16 }
 0x16d   :  { %178 = vst.msk [vmem:[%s332_s1 + $0x8] sm:$0xff] %vm30_vm0, %v173_v18 }
 0x16e   :  { %177 = vst.msk [vmem:[%s332_s1] sm:$0xff] %vm30_vm0, %v172_v20 }
 0x172   :  { %v217_v23 = vpop.f32.mrb[0].mxu1 }
 0x173   :  { %v175_v24 = vadd.f32 %v217_v23, %v41_v21  ;;  %v163_v25 = vpop.f32.mrb[1].mxu1 }
 0x174   :  { %v174_v26 = vadd.f32 %v163_v25, %v40_v22 }
 0x175   :  { %180 = vst.msk [vmem:[%s332_s1 + $0x18] sm:$0xff] %vm30_vm0, %v175_v24 }
 0x176   :  { %179 = vst.msk [vmem:[%s332_s1 + $0x10] sm:$0xff] %vm30_vm0, %v174_v26 }
 0x177   :  { %200 = vsyncpa [#allocation3], 1 }

</bundles_post_ra>
